<compile_context>
chip_gen: v7x
topology: tpu7x:2x2x1
jax: 0.10.0
libtpu: 0.0.40
codegen_flags: <defaults>
</compile_context>

<pallas_src>
import jax
import jax.numpy as jnp
from jax.experimental import pallas as pl
from jax.experimental.pallas import tpu as pltpu


def _mlp_kernel(x_ref, w1_ref, b1_ref, w2_ref, b2_ref, o_ref):
    """One lane-dense batch tile: x^T (2, TB) -> y^T (3, TB). Batch on lanes."""
    x = x_ref[...]                                    # (2, TB)
    w1 = w1_ref[...]                                  # (8, 2)  == fc1.weight
    # fc1: K=2 contraction -> two VPU broadcast FMAs (MXU would be ~empty).
    h = (w1[:, 0:1] * x[0:1, :]
         + w1[:, 1:2] * x[1:2, :]
         + b1_ref[...])                               # (8, TB)
    h = jnp.maximum(h, 0.0)                           # F.relu
    # fc2: (3, 8) @ (8, TB).  Tiny M/K (MXU mostly idle) but fully hidden
    # under the DMA; kept on the MXU for clarity (review: neutral).
    y = jnp.dot(w2_ref[...], h,
                preferred_element_type=jnp.float32) + b2_ref[...]   # (3, TB)
    # F.leaky_relu(y, negative_slope=1.0) is the identity -> omitted.
    o_ref[...] = y.astype(o_ref.dtype)


def network_forward_t(xt, w1, b1, w2, b2, *, tb=65536, allow_input_fusion=False):
    """Feature-major forward (preferred API, no layout plumbing).

    xt: (2, B) f32  (== x^T, batch on the lane axis)
    w1: (8, 2)  b1: (8, 1)  w2: (3, 8)  b2: (3, 1)
    returns y^T: (3, B) f32
    """
    feat, B = xt.shape
    assert feat == 2, f"expected (2, B) feature-major input, got {xt.shape}"

    # Lane-dense tile: multiple of 128, at least 128, no larger than what
    # covers B.  Ragged final block is handled by Pallas (masked store).
    tb_cap = 128 * pl.cdiv(B, 128)
    tb_eff = min(max(128, (int(tb) // 128) * 128), tb_cap)
    n_tiles = pl.cdiv(B, tb_eff)

    const = lambda i: (0, 0)                          # weights stay VMEM-resident
    cparams = pltpu.CompilerParams(
        dimension_semantics=("parallel",),            # megacore split on v7x
        vmem_limit_bytes=32 * 1024 * 1024,            # headroom on v5e (16MiB default)
        allow_input_fusion=([True] * 5) if allow_input_fusion else None,
    )
    return pl.pallas_call(
        _mlp_kernel,
        out_shape=jax.ShapeDtypeStruct((3, B), jnp.float32),
        grid=(n_tiles,),
        in_specs=[
            pl.BlockSpec((2, tb_eff), lambda i: (0, i)),   # x^T tile (lane-dense)
            pl.BlockSpec((8, 2), const),                   # fc1.weight
            pl.BlockSpec((8, 1), const),                   # fc1.bias
            pl.BlockSpec((3, 8), const),                   # fc2.weight
            pl.BlockSpec((3, 1), const),                   # fc2.bias
        ],
        out_specs=pl.BlockSpec((3, tb_eff), lambda i: (0, i)),
        compiler_params=cparams,
        cost_estimate=pl.CostEstimate(flops=80 * B, transcendentals=0,
                                      bytes_accessed=20 * B),
    )(xt, w1, b1, w2, b2)


def reference_forward(x, w1, b1, w2, b2):
    """Plain-XLA forward; also the fast path for tiny batches."""
    h = jnp.maximum(x @ w1.T + b1.T, 0.0)
    return h @ w2.T + b2.T          # leaky_relu with slope 1.0 == identity


def network_forward(x, w1, b1, w2, b2, *, tb=65536, pallas_min_batch=1024):
    """Batch-major forward matching the PyTorch module: x (B, 2) -> (B, 3).

    Tiny batches (the module's mini_batch_size=8) use plain fused XLA — the
    Pallas kernel would be pure launch/layout overhead there.  Large batches
    route to the Pallas kernel; prefer calling `network_forward_t` directly
    with feature-major data to avoid the transposes entirely.
    """
    B = x.shape[0]
    if B < pallas_min_batch:
        return reference_forward(x, w1, b1, w2, b2)
    yt = network_forward_t(x.T, w1, b1, w2, b2, tb=tb, allow_input_fusion=True)
    return yt.T


def init_params(key):
    """PyTorch nn.Linear-style init: U[-1/sqrt(fan_in), 1/sqrt(fan_in)].

    Weights in PyTorch (out, in) shape; biases as (out, 1) columns so they
    broadcast along the lane/batch axis inside the kernel.
    """
    k1, k2, k3, k4 = jax.random.split(key, 4)
    bnd1 = 1.0 / jnp.sqrt(jnp.float32(2))
    bnd2 = 1.0 / jnp.sqrt(jnp.float32(8))
    w1 = jax.random.uniform(k1, (8, 2), jnp.float32, -bnd1, bnd1)   # fc1.weight
    b1 = jax.random.uniform(k2, (8, 1), jnp.float32, -bnd1, bnd1)   # fc1.bias
    w2 = jax.random.uniform(k3, (3, 8), jnp.float32, -bnd2, bnd2)   # fc2.weight
    b2 = jax.random.uniform(k4, (3, 1), jnp.float32, -bnd2, bnd2)   # fc2.bias
    return w1, b1, w2, b2


if __name__ == "__main__":
    key = jax.random.PRNGKey(0)
    k1, k2, k3, kp = jax.random.split(key, 4)
    w1, b1, w2, b2 = init_params(kp)

    # TODO(synk): the PyTorch forward prints x[0], x[1], x[2] (host-side
    # side-effect); not reproduced inside the kernel.

    # 1) Feature-major Pallas kernel at the module's mini_batch_size = 8
    #    (exercises a ragged single block smaller than the 128-lane tile).
    x8 = jax.random.normal(k1, (8, 2), jnp.float32)
    y8t = jax.block_until_ready(network_forward_t(x8.T, w1, b1, w2, b2))
    assert y8t.shape == (3, 8)
    assert jnp.allclose(y8t.T, reference_forward(x8, w1, b1, w2, b2),
                        atol=1e-5, rtol=1e-5)

    # 2) Non-multiple-of-tile batch: exercises the masked final-block store
    #    path that replaced jnp.pad / output slicing.
    x300 = jax.random.normal(k2, (300, 2), jnp.float32)
    y300t = jax.block_until_ready(
        network_forward_t(x300.T, w1, b1, w2, b2, tb=128))
    assert y300t.shape == (3, 300)
    assert jnp.allclose(y300t.T, reference_forward(x300, w1, b1, w2, b2),
                        atol=1e-5, rtol=1e-5)

    # 3) Batch-major dispatcher: XLA fast path at B=8 ...
    y_small = jax.block_until_ready(network_forward(x8, w1, b1, w2, b2))
    assert y_small.shape == (8, 3)
    assert jnp.allclose(y_small, reference_forward(x8, w1, b1, w2, b2),
                        atol=1e-5, rtol=1e-5)

    # ... and Pallas path (with input-fusion of the transpose) above threshold.
    x_big = jax.random.normal(k3, (4096, 2), jnp.float32)
    y_big = jax.block_until_ready(
        network_forward(x_big, w1, b1, w2, b2, pallas_min_batch=1024))
    assert y_big.shape == (4096, 3)
    assert jnp.allclose(y_big, reference_forward(x_big, w1, b1, w2, b2),
                        atol=1e-5, rtol=1e-5)

    print("KERNEL_OK")
</pallas_src>

<mosaic_0001>
module attributes {stable_mosaic.version = 11 : i64} {
  func.func @_mlp_kernel(%arg0: i32, %arg1: memref<2x128xf32, #tpu.memory_space<vmem>>, %arg2: memref<8x2xf32, #tpu.memory_space<vmem>>, %arg3: memref<8x1xf32, #tpu.memory_space<vmem>>, %arg4: memref<3x8xf32, #tpu.memory_space<vmem>>, %arg5: memref<3x1xf32, #tpu.memory_space<vmem>>, %arg6: memref<3x128xf32, #tpu.memory_space<vmem>>) attributes {dimension_semantics = [#tpu.dimension_semantics<parallel>], iteration_bounds = array<i64: 1>, scalar_prefetch = 0 : i64, scratch_operands = 0 : i64, tpu.core_type = #tpu.core_type<tc>, window_params = [{transform_indices = @transform_0, window_bounds = array<i64: 2, 128>}, {pipeline_mode = #tpu.pipeline_mode<synchronous>, transform_indices = @transform_1, window_bounds = array<i64: 8, 2>}, {pipeline_mode = #tpu.pipeline_mode<synchronous>, transform_indices = @transform_2, window_bounds = array<i64: 8, 1>}, {pipeline_mode = #tpu.pipeline_mode<synchronous>, transform_indices = @transform_3, window_bounds = array<i64: 3, 8>}, {pipeline_mode = #tpu.pipeline_mode<synchronous>, transform_indices = @transform_4, window_bounds = array<i64: 3, 1>}, {transform_indices = @transform_5, window_bounds = array<i64: 3, 128>}]} {
    %c0 = arith.constant 0 : index
    %c0_0 = arith.constant 0 : index
    %0 = vector.load %arg1[%c0, %c0_0] : memref<2x128xf32, #tpu.memory_space<vmem>>, vector<2x128xf32>
    %c0_1 = arith.constant 0 : index
    %c0_2 = arith.constant 0 : index
    %1 = vector.load %arg2[%c0_1, %c0_2] : memref<8x2xf32, #tpu.memory_space<vmem>>, vector<8x2xf32>
    %2 = vector.extract_strided_slice %1 {offsets = [0, 0], sizes = [8, 1], strides = [1, 1]} : vector<8x2xf32> to vector<8x1xf32>
    %3 = vector.extract_strided_slice %0 {offsets = [0, 0], sizes = [1, 128], strides = [1, 1]} : vector<2x128xf32> to vector<1x128xf32>
    %4 = vector.broadcast %2 : vector<8x1xf32> to vector<8x128xf32>
    %5 = vector.broadcast %3 : vector<1x128xf32> to vector<8x128xf32>
    %6 = arith.mulf %4, %5 : vector<8x128xf32>
    %7 = vector.extract_strided_slice %1 {offsets = [0, 1], sizes = [8, 1], strides = [1, 1]} : vector<8x2xf32> to vector<8x1xf32>
    %8 = vector.extract_strided_slice %0 {offsets = [1, 0], sizes = [1, 128], strides = [1, 1]} : vector<2x128xf32> to vector<1x128xf32>
    %9 = vector.broadcast %7 : vector<8x1xf32> to vector<8x128xf32>
    %10 = vector.broadcast %8 : vector<1x128xf32> to vector<8x128xf32>
    %11 = arith.mulf %9, %10 : vector<8x128xf32>
    %12 = arith.addf %6, %11 : vector<8x128xf32>
    %c0_3 = arith.constant 0 : index
    %c0_4 = arith.constant 0 : index
    %13 = vector.load %arg3[%c0_3, %c0_4] : memref<8x1xf32, #tpu.memory_space<vmem>>, vector<8x1xf32>
    %14 = vector.broadcast %13 : vector<8x1xf32> to vector<8x128xf32>
    %15 = arith.addf %12, %14 : vector<8x128xf32>
    %cst = arith.constant 0.000000e+00 : f32
    %16 = vector.broadcast %cst : f32 to vector<8x128xf32>
    %17 = arith.maximumf %15, %16 : vector<8x128xf32>
    %c0_5 = arith.constant 0 : index
    %c0_6 = arith.constant 0 : index
    %18 = vector.load %arg4[%c0_5, %c0_6] : memref<3x8xf32, #tpu.memory_space<vmem>>, vector<3x8xf32>
    %cst_7 = arith.constant dense<0.000000e+00> : vector<3x128xf32>
    %19 = tpu.matmul %18, %17, %cst_7 {dimension_numbers = #tpu.dot_dimension_numbers<[1], [0], [0], [1], [0, 0, 1, 1], [], []>} : vector<3x8xf32>, vector<8x128xf32>, vector<3x128xf32> -> vector<3x128xf32>
    %c0_8 = arith.constant 0 : index
    %c0_9 = arith.constant 0 : index
    %20 = vector.load %arg5[%c0_8, %c0_9] : memref<3x1xf32, #tpu.memory_space<vmem>>, vector<3x1xf32>
    %21 = vector.broadcast %20 : vector<3x1xf32> to vector<3x128xf32>
    %22 = arith.addf %19, %21 : vector<3x128xf32>
    %c0_10 = arith.constant 0 : index
    %c0_11 = arith.constant 0 : index
    %23 = vector.load %arg6[%c0_10, %c0_11] : memref<3x128xf32, #tpu.memory_space<vmem>>, vector<3x128xf32>
    tpu.vector_store %arg6[%c0_10, %c0_11], %22 {strides = array<i32>} : memref<3x128xf32, #tpu.memory_space<vmem>>, vector<3x128xf32>,
    return
  }
  func.func @transform_0(%arg0: i32) -> (i32, i32) {
    %c0_i32 = arith.constant 0 : i32
    %c0_i32_0 = arith.constant 0 : i32
    return %c0_i32, %arg0 : i32, i32
  }
  func.func @transform_1(%arg0: i32) -> (i32, i32) {
    %c0_i32 = arith.constant 0 : i32
    %c0_i32_0 = arith.constant 0 : i32
    %c0_i32_1 = arith.constant 0 : i32
    return %c0_i32, %c0_i32_0 : i32, i32
  }
  func.func @transform_2(%arg0: i32) -> (i32, i32) {
    %c0_i32 = arith.constant 0 : i32
    %c0_i32_0 = arith.constant 0 : i32
    %c0_i32_1 = arith.constant 0 : i32
    return %c0_i32, %c0_i32_0 : i32, i32
  }
  func.func @transform_3(%arg0: i32) -> (i32, i32) {
    %c0_i32 = arith.constant 0 : i32
    %c0_i32_0 = arith.constant 0 : i32
    %c0_i32_1 = arith.constant 0 : i32
    return %c0_i32, %c0_i32_0 : i32, i32
  }
  func.func @transform_4(%arg0: i32) -> (i32, i32) {
    %c0_i32 = arith.constant 0 : i32
    %c0_i32_0 = arith.constant 0 : i32
    %c0_i32_1 = arith.constant 0 : i32
    return %c0_i32, %c0_i32_0 : i32, i32
  }
  func.func @transform_5(%arg0: i32) -> (i32, i32) {
    %c0_i32 = arith.constant 0 : i32
    %c0_i32_0 = arith.constant 0 : i32
    return %c0_i32, %arg0 : i32, i32
  }
}

</mosaic_0001>

<bundles_post_ra>
// kernel: tpu_custom_call.1
= control target key start
LH: loop header
LB: loop body
LE: loop exit
PB: predicated region body
PF: predicated region fallthrough
CT: control target
= control target key end

     0   :  { %v188_v2 = vmov 0   ;;  %s250_s0 = inlined_call_operand.vmem [shape: f32[2,8], index: 0, kind: input, shape index: {}]   ;;  %s251_s1 = inlined_call_operand.vmem [shape: f32[8,2], index: 1, kind: input, shape index: {}]   ;;  %s252_s2 = inlined_call_operand.vmem [shape: f32[8,1], index: 2, kind: input, shape index: {}]   ;;  %s253_s3 = inlined_call_operand.vmem [shape: f32[3,8], index: 3, kind: input, shape index: {}]   ;;  %s254_s4 = inlined_call_operand.vmem [shape: f32[3,1], index: 4, kind: input, shape index: {}]   ;;  %s255_s5 = inlined_call_operand.hbm [shape: f32[3,8], index: 5, kind: output, shape index: {}]  }
   0x1   :  { %v22_v0 = vld [vmem:[%s251_s1] sm:$0xff]  ;;  %160 = vset.pattern.permute.xlu0 %v188_v2  ;;  %162 = vset.pattern.permute.xlu1 %v188_v2 }
   0x2   :  { %v43_v1 = vld [vmem:[%s252_s2] sm:$0xff] }
   0x3   :  { %10 = vsyncpa [#allocation3], 0  ;;  %25 = vperm.xlu0 %160, %v22_v0   ;;  %46 = vperm.xlu1 %162, %v43_v1   ;;  %v52_v3 = vld [vmem:[%s254_s4] sm:$0x7]  ;;  %v189_v4 = vmov 1   ;;  %v190_v5 = vmov 0.0   ;;  %v28_v6 = vlaneseq }
   0x4   :  { %150 = vmatprep.subr.mxu0 %v190_v5  ;;  %vm191_vm0 = vmmov 0   ;;  %v21_v10 = vld [vmem:[%s250_s0] sm:$0x3]  ;;  %vm58_vm1 = vcmask 64512   ;;  %s192_s25 = smov [#allocation2]  }
   0x5   :  { %152 = vmatprep.mubr.msk.f32.mxu0 %vm191_vm0, %v190_v5  ;;  %v29_v7 = vshrl.u32 %v28_v6, 7  ;;  %v51_v21 = vld [vmem:[%s253_s3] sm:$0x7]  ;;  %s139_s26 = sshll.u32 %s192_s25, 4  ;;  %s140_s26 = int_to_ptr.vmem [resolvable:$true] %s139_s26 }
   0x6   :  { %s164_s0 = scalar_lea.vmem %s140_s26, 64  ;;  %p169_p1 = scmp.lt.s32.totalorder %s140_s26, %s140_s26 }
   0x7   :  { %161 = vset.pattern.permute.xlu0 %v189_v4  ;;  %55 = vperm.xlu1 %162, %v52_v3   ;;  %v30_v8 = vsub.s32 0, %v29_v7  ;;  %v39_v9 = vsub.s32 1, %v29_v7  ;;  %p165_p0 = scmp.ne.s32.totalorder %s140_s26, %s164_s0  ;;  %p170_p2 = scmp.lt.s32.totalorder %s164_s0, %s164_s0 }
   0x8   :  { %34 = vperm.xlu0 %161, %v22_v0  }
   0x9   :  { %v31_v12 = vrot.slane %v21_v10, %v30_v8  ;;  %v40_v13 = vrot.slane %v21_v10, %v39_v9  ;;  %p171_p3 = por %p170_p2, %p169_p1 }
   0xb   :  { %p172_p4 = pnand %p171_p3, %p165_p0 }
   0xc   :  { %163 = vset.pattern.permute.xlu0 %v188_v2 }
  0x82   :  { %v26_v11 = vpop.permute.xlu0 %25  ;;  %v47_v18 = vpop.permute.xlu1 %46 }
  0x83   :  { %v32_v15 = vmul.f32 %v31_v12, %v26_v11 }
  0x86   :  { %v56_v22 = vpop.permute.xlu1 %55 }
  0x87   :  { %v35_v14 = vpop.permute.xlu0 %34 }
  0x88   :  { %v41_v16 = vmul.f32 %v40_v13, %v35_v14 }
  0x8a   :  { %v42_v17 = vadd.f32 %v41_v16, %v32_v15 }
  0x8c   :  { %v49_v19 = vadd.f32 %v47_v18, %v42_v17 }
  0x8e   :  { %v50_v20 = vmax.f32 %v49_v19, 0.0 }
  0x90   :  { %151 = vmatpush3.msra.mxu0 %v50_v20 }
  0x91   :  { %153 = vmatmul.mubr.msk.f32.vlgmr.msra.gmra.mrb[0].mxu0 %vm58_vm1, %v51_v21 }
 0x164   :  { %v128_v23 = vpop.f32.mrb[0].mxu0 }
 0x165   :  { %v129_v24 = vadd.f32 %v128_v23, %v56_v22  ;;  %v154_v25 = vpop.f32.mrb[1].mxu0 }
 0x167   :  { %132 = vst [vmem:[#allocation2] sm:$0x7] %v129_v24 }
 0x168   :  { %175 = shalt.err (!%p172_p4)
}
 0x169   :  { %s176_s28 = scalar_lea.hbm %s255_s5, 64 }
 0x16a   :  { %p177_p5 = scmp.ne.s32.totalorder %s255_s5, %s176_s28  ;;  %p180_p6 = scmp.lt.u32.totalorder %s176_s28, %s255_s5 }
 0x16c   :  { %p182_p7 = pnand %p180_p6, %p177_p5 }
 0x16e   :  { %185 = shalt.err (!%p182_p7)
}
 0x16f   :  { %142 = dma.vmem_to_hbm [thread:$0]  %s140_s26, 64, %s255_s5, [#allocation3]  }
 0x170   :  { %186 = dma.done.wait [#allocation3], 64  }
 0x171   :  { %187 = vsyncadd [#allocation3], 4294967232 }
 0x172   :  { %146 = vsyncpa [#allocation3], 1 }

</bundles_post_ra>
